<compile_context>
chip_gen: v7x
topology: tpu7x:2x2x1
jax: 0.10.0
libtpu: 0.0.40
codegen_flags: <defaults>
</compile_context>

<pallas_src>
import functools

import jax
import jax.numpy as jnp
from jax.experimental import pallas as pl
from jax.experimental.pallas import tpu as pltpu


def _readout_kernel(h_ref, o_ref, acc_ref, *, n_total, tile_n, k_way,
                    tiles_per_part, emit_mask, finalize_sigmoid):
    """Accumulate column sums of one (tile_n, tile_d) node block.

    Grid = (node partition p [parallel], feature stripe j [parallel],
            node tile i [arbitrary / reduction, innermost]).
    """
    p = pl.program_id(0)
    i = pl.program_id(2)

    @pl.when(i == 0)
    def _():
        acc_ref[...] = jnp.zeros_like(acc_ref)

    def _accumulate(x):
        # (tile_n, tile_d) -> (tile_n // (8*K), 8*K, tile_d), reduce leading
        # axis.  The (8*K, tile_d) accumulator gives K independent per-vreg
        # add chains per step (fills the 4 VALU slots) instead of one long
        # serial chain when tile_d is a single vreg wide.
        xg = x.reshape(tile_n // (8 * k_way), 8 * k_way, x.shape[-1])
        acc_ref[...] += jnp.sum(xg, axis=0)

    if emit_mask:
        # Runtime-gate the row mask: only tiles whose row range extends past
        # the real node count pay the iota/compare/select; all other tiles
        # stay pure vld + vadd.
        g = p * tiles_per_part + i                  # global node-tile index
        needs_mask = (g + 1) * tile_n > n_total

        @pl.when(needs_mask)
        def _():
            x = h_ref[...].astype(jnp.float32)
            row_ids = g * tile_n + jax.lax.broadcasted_iota(
                jnp.int32, x.shape, 0)
            _accumulate(jnp.where(row_ids < n_total, x, 0.0))

        @pl.when(jnp.logical_not(needs_mask))
        def _():
            _accumulate(h_ref[...].astype(jnp.float32))
    else:
        _accumulate(h_ref[...].astype(jnp.float32))

    @pl.when(i == tiles_per_part - 1)
    def _():
        # Single cross-sublane (XLU) fold per (p, j), off the hot DMA loop.
        total = jnp.sum(acc_ref[...], axis=0, keepdims=True)   # (1, tile_d)
        if finalize_sigmoid:
            total = jax.nn.sigmoid(total * (1.0 / n_total))
        o_ref[...] = total.reshape(o_ref.shape).astype(o_ref.dtype)


def readout(h, *, block_bytes=8 * 1024 * 1024):
    """Pallas implementation of DGI Readout: sigmoid(mean(h, axis=0))[None]."""
    N, D = h.shape
    dtype_bytes = jnp.dtype(h.dtype).itemsize

    # Sublane-packing granule of the input dtype (8 rows f32, 16 bf16, 32 i8).
    granule = max(8, 32 // dtype_bytes)

    # Feature ("column") stripes only when each stripe keeps per-row DMA runs
    # >= ~1 KiB (otherwise column striping turns every row into a short
    # strided DMA) and stays 128-lane aligned.
    if D % 256 == 0 and (D // 2) * dtype_bytes >= 1024:
        tile_d, num_d = D // 2, 2
    else:
        tile_d, num_d = D, 1

    # K-way accumulator widening for narrow stripes (see _accumulate).
    if tile_d <= 256:
        k_way = 4
    elif tile_d <= 512:
        k_way = 2
    else:
        k_way = 1
    row_align = max(granule, 8 * k_way)

    # Node-axis tile sized to ~block_bytes per input block (8 MiB default:
    # keeps the fixed ~0.35 us per-grid-step cost <10% of the HBM stream time
    # on v6e/v7x; 4 MiB was already fine for v5e).  Clamp so tiny inputs get a
    # single block.
    n_padded = pl.cdiv(N, row_align) * row_align
    tile_n = (block_bytes // (tile_d * dtype_bytes)) // row_align * row_align
    tile_n = max(row_align, min(tile_n, n_padded))
    num_n = pl.cdiv(N, tile_n)                  # node tiles over real data

    # Megacore split of the NODE axis when the feature axis wasn't split and
    # there is more than one node tile: full-row contiguous DMA per core and
    # both v7x TensorCores stay busy.  Neutral on single-core v5e/v6e.
    num_p = 2 if (num_d == 1 and num_n >= 2) else 1
    tiles_per_part = pl.cdiv(num_n, num_p)

    # Emit the masked path only if some tile's row range extends past N.
    emit_mask = (num_p * tiles_per_part * tile_n) != N
    finalize_sigmoid = (num_p == 1)

    def in_index_map(p, j, i):
        g = p * tiles_per_part + i
        # Tiles past the last real block (possible when num_n is odd and the
        # node axis is split) re-read the last block; the kernel masks their
        # rows to zero so they contribute nothing.
        g = jnp.minimum(g, num_n - 1)
        return (g, j)

    out_dtype = h.dtype if finalize_sigmoid else jnp.float32
    in_block_bytes = tile_n * tile_d * dtype_bytes
    vmem_limit = min(max(32 * 1024 * 1024, 2 * in_block_bytes + (4 << 20)),
                     56 * 1024 * 1024)

    kernel = functools.partial(
        _readout_kernel, n_total=N, tile_n=tile_n, k_way=k_way,
        tiles_per_part=tiles_per_part, emit_mask=emit_mask,
        finalize_sigmoid=finalize_sigmoid)

    out = pl.pallas_call(
        kernel,
        out_shape=jax.ShapeDtypeStruct((num_p, 1, D), out_dtype),
        grid_spec=pltpu.PrefetchScalarGridSpec(
            num_scalar_prefetch=0,
            grid=(num_p, num_d, tiles_per_part),        # reduction axis last
            # NOTE: pipeline_mode=pl.Buffered(3) on the input spec is a knob
            # to sweep if xprof shows exposed DMA-start latency on v7x.
            in_specs=[pl.BlockSpec((tile_n, tile_d), in_index_map)],
            out_specs=pl.BlockSpec((1, 1, tile_d), lambda p, j, i: (p, 0, j)),
            scratch_shapes=[pltpu.VMEM((8 * k_way, tile_d), jnp.float32)],
        ),
        compiler_params=pltpu.CompilerParams(
            dimension_semantics=("parallel", "parallel", "arbitrary"),
            vmem_limit_bytes=vmem_limit,
        ),
    )(h)

    if finalize_sigmoid:
        return out.reshape(1, D)
    # Node-split path: combine the tiny per-core partial sums and apply the
    # mean + sigmoid on the (1, D) result in plain JAX.
    partial = jnp.sum(out[:, 0, :], axis=0, keepdims=True)
    return jax.nn.sigmoid(partial * (1.0 / N)).astype(h.dtype)


if __name__ == "__main__":
    def _ref(h):
        m = jnp.mean(h.astype(jnp.float32), axis=0, keepdims=True)
        return jax.nn.sigmoid(m).astype(h.dtype)

    # Case 1: small even shapes (single tile, no masking).
    h1 = jax.random.normal(jax.random.PRNGKey(0), (64, 128), dtype=jnp.float32)
    o1 = readout(h1)
    jax.block_until_ready(o1)
    assert o1.shape == (1, 128)
    assert jnp.allclose(o1, _ref(h1), atol=1e-6, rtol=1e-6), "mismatch (case 1)"

    # Case 2: non-divisible node count (runtime-gated masked tail tile).
    h2 = jax.random.normal(jax.random.PRNGKey(1), (70, 256), dtype=jnp.float32)
    o2 = readout(h2)
    jax.block_until_ready(o2)
    assert o2.shape == (1, 256)
    assert jnp.allclose(o2, _ref(h2), atol=1e-6, rtol=1e-6), "mismatch (case 2)"

    # Case 3: DMA-friendly feature-striped "parallel" path.
    h3 = jax.random.normal(jax.random.PRNGKey(2), (96, 1024), dtype=jnp.float32)
    o3 = readout(h3)
    jax.block_until_ready(o3)
    assert o3.shape == (1, 1024)
    assert jnp.allclose(o3, _ref(h3), atol=1e-6, rtol=1e-6), "mismatch (case 3)"

    # Case 4: node-axis megacore split (small block_bytes forces >= 2 node
    # tiles at a small shape), incl. a fully-padded clamped tail tile.
    h4 = jax.random.normal(jax.random.PRNGKey(3), (300, 128), dtype=jnp.float32)
    o4 = readout(h4, block_bytes=64 * 1024)
    jax.block_until_ready(o4)
    assert o4.shape == (1, 128)
    assert jnp.allclose(o4, _ref(h4), atol=1e-6, rtol=1e-6), "mismatch (case 4)"

    print("KERNEL_OK")
</pallas_src>

<mosaic_0001>
module attributes {stable_mosaic.version = 11 : i64} {
  func.func @_readout_kernel(%arg0: i32, %arg1: i32, %arg2: i32, %arg3: memref<64x128xf32, #tpu.memory_space<vmem>>, %arg4: memref<1x1x128xf32, #tpu.memory_space<vmem>>, %arg5: memref<32x128xf32, #tpu.memory_space<vmem>>) attributes {dimension_semantics = [#tpu.dimension_semantics<parallel>, #tpu.dimension_semantics<parallel>, #tpu.dimension_semantics<arbitrary>], iteration_bounds = array<i64: 1, 1, 1>, scalar_prefetch = 0 : i64, scratch_operands = 1 : i64, tpu.core_type = #tpu.core_type<tc>, window_params = [{transform_indices = @transform_0, window_bounds = array<i64: 64, 128>}, {transform_indices = @transform_1, window_bounds = array<i64: 1, 1, 128>}]} {
    %c0_i32 = arith.constant 0 : i32
    %0 = arith.cmpi eq, %arg2, %c0_i32 : i32
    %1 = arith.extui %0 : i1 to i32
    %c0_i32_0 = arith.constant 0 : i32
    %2 = arith.cmpi ne, %1, %c0_i32_0 : i32
    scf.if %2 {
      %cst_8 = arith.constant 0.000000e+00 : f32
      %12 = vector.broadcast %cst_8 : f32 to vector<32x128xf32>
      %c0_9 = arith.constant 0 : index
      %c0_10 = arith.constant 0 : index
      %13 = vector.load %arg5[%c0_9, %c0_10] : memref<32x128xf32, #tpu.memory_space<vmem>>, vector<32x128xf32>
      tpu.vector_store %arg5[%c0_9, %c0_10], %12 {strides = array<i32>} : memref<32x128xf32, #tpu.memory_space<vmem>>, vector<32x128xf32>,
    } else {
    }
    %c0 = arith.constant 0 : index
    %c0_1 = arith.constant 0 : index
    %3 = vector.load %arg3[%c0, %c0_1] : memref<64x128xf32, #tpu.memory_space<vmem>>, vector<64x128xf32>
    %4 = vector.shape_cast %3 : vector<64x128xf32> to vector<2x32x128xf32>
    %c0_2 = arith.constant 0 : index
    %c0_3 = arith.constant 0 : index
    %5 = vector.load %arg5[%c0_2, %c0_3] : memref<32x128xf32, #tpu.memory_space<vmem>>, vector<32x128xf32>
    %cst = arith.constant dense<0.000000e+00> : vector<32x128xf32>
    %6 = vector.multi_reduction <add>, %4, %cst [0] : vector<2x32x128xf32> to vector<32x128xf32>
    %7 = arith.addf %5, %6 : vector<32x128xf32>
    %c0_4 = arith.constant 0 : index
    %c0_5 = arith.constant 0 : index
    %8 = vector.load %arg5[%c0_4, %c0_5] : memref<32x128xf32, #tpu.memory_space<vmem>>, vector<32x128xf32>
    tpu.vector_store %arg5[%c0_4, %c0_5], %7 {strides = array<i32>} : memref<32x128xf32, #tpu.memory_space<vmem>>, vector<32x128xf32>,
    %c0_i32_6 = arith.constant 0 : i32
    %9 = arith.cmpi eq, %arg2, %c0_i32_6 : i32
    %10 = arith.extui %9 : i1 to i32
    %c0_i32_7 = arith.constant 0 : i32
    %11 = arith.cmpi ne, %10, %c0_i32_7 : i32
    scf.if %11 {
      %c0_8 = arith.constant 0 : index
      %c0_9 = arith.constant 0 : index
      %12 = vector.load %arg5[%c0_8, %c0_9] : memref<32x128xf32, #tpu.memory_space<vmem>>, vector<32x128xf32>
      %cst_10 = arith.constant dense<0.000000e+00> : vector<128xf32>
      %13 = vector.multi_reduction <add>, %12, %cst_10 [0] : vector<32x128xf32> to vector<128xf32>
      %14 = vector.shape_cast %13 : vector<128xf32> to vector<1x128xf32>
      %cst_11 = arith.constant 1.562500e-02 : f32
      %15 = vector.broadcast %cst_11 : f32 to vector<1x128xf32>
      %16 = arith.mulf %14, %15 : vector<1x128xf32>
      %17 = arith.negf %16 : vector<1x128xf32>
      %18 = math.exp %17 : vector<1x128xf32>
      %cst_12 = arith.constant 1.000000e+00 : f32
      %19 = vector.broadcast %cst_12 : f32 to vector<1x128xf32>
      %20 = arith.addf %19, %18 : vector<1x128xf32>
      %21 = arith.divf %19, %20 : vector<1x128xf32>
      %22 = vector.shape_cast %21 : vector<1x128xf32> to vector<1x1x128xf32>
      %c0_13 = arith.constant 0 : index
      %c0_14 = arith.constant 0 : index
      %c0_15 = arith.constant 0 : index
      %23 = vector.load %arg4[%c0_13, %c0_14, %c0_15] : memref<1x1x128xf32, #tpu.memory_space<vmem>>, vector<1x1x128xf32>
      tpu.vector_store %arg4[%c0_13, %c0_14, %c0_15], %22 {strides = array<i32>} : memref<1x1x128xf32, #tpu.memory_space<vmem>>, vector<1x1x128xf32>,
    } else {
    }
    return
  }
  func.func @transform_0(%arg0: i32, %arg1: i32, %arg2: i32) -> (i32, i32) {
    %c1_i32 = arith.constant 1 : i32
    %0 = arith.muli %arg0, %c1_i32 : i32
    %1 = arith.addi %0, %arg2 : i32
    %c0_i32 = arith.constant 0 : i32
    %2 = arith.minsi %1, %c0_i32 : i32
    %c0_i32_0 = arith.constant 0 : i32
    return %2, %arg1 : i32, i32
  }
  func.func @transform_1(%arg0: i32, %arg1: i32, %arg2: i32) -> (i32, i32, i32) {
    %c0_i32 = arith.constant 0 : i32
    %c0_i32_0 = arith.constant 0 : i32
    return %arg0, %c0_i32, %arg1 : i32, i32, i32
  }
}

</mosaic_0001>

<bundles_post_ra>
// kernel: tpu_custom_call.1
= control target key start
LH: loop header
LB: loop body
LE: loop exit
PB: predicated region body
PF: predicated region fallthrough
CT: control target
= control target key end

     0   :  { %6 = vsyncpa [#allocation4], 0  ;;  %s201_s0 = inlined_call_operand.hbm [shape: f32[64,128], index: 0, kind: input, shape index: {}]   ;;  %s202_s1 = inlined_call_operand.hbm [shape: f32[1,1,128], index: 1, kind: output, shape index: {}]  }
   0x1   :  { %7 = vsyncpa [#allocation5], 0  ;;  %s163_s6 = smov [#allocation3]   ;;  %s115_s10 = scalar_lea.hbm %s201_s0, 1024 }
   0x2   :  { %s19_s7 = sshll.u32 %s163_s6, 4  ;;  %p116_p0 = scmp.ne.s32.totalorder %s201_s0, %s115_s10  ;;  %s20_s7 = int_to_ptr.vmem [resolvable:$true] %s19_s7 }
   0x3   :  { %p119_p1 = scmp.lt.u32.totalorder %s115_s10, %s201_s0 }
   0x5   :  { %p121_p2 = pnand %p119_p1, %p116_p0 }
   0x7   :  { %124 = shalt.err (!%p121_p2)
}
   0x8   :  { %s125_s15 = scalar_lea.vmem %s20_s7, 1024  ;;  %p130_p4 = scmp.lt.s32.totalorder %s20_s7, %s20_s7 }
   0x9   :  { %p126_p3 = scmp.ne.s32.totalorder %s20_s7, %s125_s15  ;;  %p131_p5 = scmp.lt.s32.totalorder %s125_s15, %s125_s15 }
   0xb   :  { %p132_p6 = por %p131_p5, %p130_p4 }
   0xd   :  { %p133_p7 = pnand %p132_p6, %p126_p3 }
   0xf   :  { %136 = shalt.err (!%p133_p7)
}
  0x10   :  { %s164_s16 = smov 128   ;;  %s165_s17 = smov 8  }
  0x11   :  { %25 = dma.hbm_to_vmem [thread:$0]  %s201_s0, 1024, %s20_s7, [#allocation4], %s164_s16, %s164_s16, %s165_s17  }
  0x12   :  { %159 = dma.done.wait [#allocation4], 1024  }
  0x13   :  { %160 = vsyncadd [#allocation4], 4294966272  ;;  %v41_v0 = vld [vmem:[#allocation3] sm:$0xff]  ;;  %v42_v1 = vld [vmem:[#allocation3 + $0x8] sm:$0xff]  ;;  %s166_s0 = smov [#allocation6]  }
  0x14   :  { %v43_v2 = vld [vmem:[#allocation3 + $0x10] sm:$0xff]  ;;  %v44_v3 = vld [vmem:[#allocation3 + $0x18] sm:$0xff]  ;;  %v45_v4 = vld [vmem:[#allocation3 + $0x20] sm:$0xff]  ;;  %s95_s20 = sshll.u32 %s166_s0, 4  ;;  %s96_s20 = int_to_ptr.vmem [resolvable:$true] %s95_s20 }
  0x15   :  { %v46_v5 = vld [vmem:[#allocation3 + $0x28] sm:$0xff]  ;;  %v47_v6 = vld [vmem:[#allocation3 + $0x30] sm:$0xff]  ;;  %v48_v7 = vld [vmem:[#allocation3 + $0x38] sm:$0xff]  ;;  %v53_v8 = vadd.f32 %v45_v4, %v41_v0  ;;  %s137_s21 = scalar_lea.vmem %s96_s20, 16  ;;  %s141_s22 = scalar_lea.vmem %s96_s20, 32 }
  0x16   :  { %v54_v9 = vadd.f32 %v46_v5, %v42_v1  ;;  %v55_v10 = vadd.f32 %v47_v6, %v43_v2  ;;  %v56_v11 = vadd.f32 %v48_v7, %v44_v3  ;;  %p138_p8 = scmp.ne.s32.totalorder %s96_s20, %s137_s21  ;;  %p142_p9 = scmp.lt.s32.totalorder %s96_s20, %s96_s20 }
  0x17   :  { %p143_p10 = scmp.lt.s32.totalorder %s141_s22, %s137_s21 }
  0x18   :  { %v72_v12 = vadd.f32 %v54_v9, %v53_v8 }
  0x19   :  { %p144_p11 = por %p143_p10, %p142_p9 }
  0x1a   :  { %v73_v13 = vadd.f32 %v72_v12, %v55_v10 }
  0x1b   :  { %p145_p12 = pnand %p144_p11, %p138_p8 }
  0x1c   :  { %v74_v14 = vadd.f32 %v73_v13, %v56_v11 }
  0x1e   :  { %v75_v15 = vrot.slane %v74_v14, 4 }
  0x20   :  { %v76_v16 = vadd.f32 %v75_v15, %v74_v14 }
  0x22   :  { %v77_v17 = vrot.slane %v76_v16, 2 }
  0x24   :  { %v78_v18 = vadd.f32 %v77_v17, %v76_v16 }
  0x26   :  { %v79_v19 = vrot.slane %v78_v18, 1 }
  0x28   :  { %v80_v20 = vadd.f32 %v79_v19, %v78_v18 }
  0x2a   :  { %v106_v21 = vmul.f32 -0.015625, %v80_v20 }
  0x2c   :  { %v83_v22 = vmul.f32 1.442695, %v106_v21 }
  0x2e   :  { %111 = vpow2.f32 %v83_v22 }
  0x38   :  { %v112_v23 = vpop.eup %111 }
  0x39   :  { %v85_v24 = vadd.f32 1.0, %v112_v23 }
  0x3b   :  { %113 = vrcp.f32 %v85_v24 }
  0x45   :  { %v114_v25 = vpop.eup %113 }
  0x46   :  { %88 = vst [vmem:[#allocation6] sm:$0x1] %v114_v25 }
  0x47   :  { %148 = shalt.err (!%p145_p12)
}
  0x48   :  { %s149_s25 = scalar_lea.hbm %s202_s1, 16 }
  0x49   :  { %p150_p13 = scmp.ne.s32.totalorder %s202_s1, %s149_s25  ;;  %p153_p0 = scmp.lt.u32.totalorder %s149_s25, %s202_s1 }
  0x4b   :  { %p155_p1 = pnand %p153_p0, %p150_p13 }
  0x4d   :  { %158 = shalt.err (!%p155_p1)
}
  0x4e   :  { %98 = dma.vmem_to_hbm [thread:$0]  %s96_s20, 16, %s202_s1, [#allocation5]  }
  0x4f   :  { %161 = dma.done.wait [#allocation5], 16  }
  0x50   :  { %162 = vsyncadd [#allocation5], 4294967280 }
  0x51   :  { %102 = vsyncpa [#allocation4], 1 }
  0x52   :  { %103 = vsyncpa [#allocation5], 1 }

</bundles_post_ra>
